<compile_context>
chip_gen: v5e
topology: v5e:2x2
jax: 0.10.0
libtpu: 0.0.40
codegen_flags: <defaults>
</compile_context>

<pallas_src>
import math
import jax
import jax.numpy as jnp
from jax.experimental import pallas as pl
from jax.experimental.pallas import tpu as pltpu


# ----------------------------------------------------------------------------
# Kernel: one batch tile (batch on lanes), full MLP, both heads fused.
# ----------------------------------------------------------------------------
def _state_recog_kernel(xt_ref, w1_ref, b1_ref, w2_ref, b2_ref,
                        wh_ref, bh_ref, out_ref):
    xt = xt_ref[...]                                        # (G, TM), compute dtype

    # Matmul operands in compute dtype (f32 or bf16); accumulate + bias/ReLU
    # epilogue in f32.  All matmuls are natural (out_features on sublanes,
    # batch on lanes) -> full-width vector ops and stores.
    h1 = jnp.dot(w1_ref[...], xt,
                 preferred_element_type=jnp.float32)        # (H, TM)
    h1 = jnp.maximum(h1 + b1_ref[...], 0.0)                 # bias + ReLU

    h2 = jnp.dot(w2_ref[...], h1.astype(w2_ref.dtype),
                 preferred_element_type=jnp.float32)        # (H, TM)
    h2 = jnp.maximum(h2 + b2_ref[...], 0.0)

    y = jnp.dot(wh_ref[...], h2.astype(wh_ref.dtype),
                preferred_element_type=jnp.float32)         # (2C, TM)
    out_ref[...] = (y + bh_ref[...]).astype(out_ref.dtype)


# ----------------------------------------------------------------------------
# Tiling policy
# ----------------------------------------------------------------------------
def _round_up(x, m):
    return ((x + m - 1) // m) * m


def _num_tensorcores():
    """Best-effort TensorCores-per-chip query (2 on v7x, 1 on v5e/v6e)."""
    try:
        info = pltpu.get_tpu_info()
        for attr in ("num_cores", "core_count", "tensorcores_per_chip"):
            v = getattr(info, attr, None)
            if isinstance(v, int) and 1 <= v <= 8:
                return v
    except Exception:
        pass
    return 1


def _choose_tile_m(N, requested, num_cores):
    """Minimal-padding batch tile.

    Targets just enough grid steps to (a) give every TensorCore work and
    (b) cap the tile at `requested` rows.  Because the batch sits on the
    lane axis, a multi-step tile must be a multiple of 128; a single tile
    covering the whole batch has no such constraint (block == full dim).
    """
    requested = max(128, int(requested))
    steps = max(num_cores, pl.cdiv(N, requested))
    if steps <= 1:
        return N                       # one full-batch block, zero padding
    tm = _round_up(pl.cdiv(N, steps), 128)
    if tm >= N:
        return N                       # grid would collapse to one step anyway
    return tm


# ----------------------------------------------------------------------------
# One-time parameter preparation (hoisted out of the per-call wrapper)
# ----------------------------------------------------------------------------
def prepare_params(params, compute_dtype=jnp.float32):
    """Fuse the mu/std heads, reshape biases to columns, cast weights.

    params: PyTorch-native layout
        (w1[H,G], b1[H], w2[H,H], b2[H], wmu[C,H], bmu[C], wstd[C,H], bstd[C])
    Returns (w1, b1, w2, b2, w_head[2C,H], b_head[2C,1]) with weights in
    `compute_dtype` and biases in float32 (column vectors for the transposed
    compute).  Call once per model, reuse across forward calls.
    """
    w1, b1, w2, b2, wmu, bmu, wstd, bstd = params
    cd = compute_dtype
    w_head = jnp.concatenate([wmu, wstd], axis=0)           # (2C, H)
    b_head = jnp.concatenate([bmu, bstd], axis=0)           # (2C,)
    return (w1.astype(cd), b1.reshape(-1, 1).astype(jnp.float32),
            w2.astype(cd), b2.reshape(-1, 1).astype(jnp.float32),
            w_head.astype(cd), b_head.reshape(-1, 1).astype(jnp.float32))


# ----------------------------------------------------------------------------
# Forward wrapper
# ----------------------------------------------------------------------------
def state_recognition_net(x, prepared, *, tile_m=8192, num_cores=None,
                          vmem_limit_bytes=None):
    """Pallas forward.  x: [N, G] -> (mu_z [N, C], std_z [N, C]), both f32.

    prepared: output of prepare_params (weights already in the matmul compute
    dtype -- jnp.float32 or jnp.bfloat16).  num_cores: TensorCores per chip
    (auto-detected if None; pass 2 on v7x to shard the batch grid axis).
    """
    w1, b1, w2, b2, wh, bh = prepared
    N, G = x.shape
    H = w1.shape[0]
    C2 = wh.shape[0]
    compute_dtype = w1.dtype

    if num_cores is None:
        num_cores = _num_tensorcores()
    tm = _choose_tile_m(N, tile_m, num_cores)
    grid = (pl.cdiv(N, tm),)

    # Single layout pass: batch -> lanes (and matmul dtype).  Everything
    # downstream (matmuls, epilogue, stores) is full lane width.
    xt = x.T.astype(compute_dtype)                          # (G, N)

    def rep2(a):  # grid-invariant full-array block (weights / biases)
        return pl.BlockSpec(a.shape, lambda i: (0, 0))

    cp_kwargs = dict(dimension_semantics=("parallel",))     # batch axis -> megacore
    if vmem_limit_bytes is not None:
        cp_kwargs["vmem_limit_bytes"] = int(vmem_limit_bytes)

    out = pl.pallas_call(
        _state_recog_kernel,
        out_shape=jax.ShapeDtypeStruct((C2, N), jnp.float32),
        grid=grid,
        in_specs=[
            pl.BlockSpec((G, tm), lambda i: (0, i)),        # x^T batch tile
            rep2(w1), rep2(b1),                             # linear1
            rep2(w2), rep2(b2),                             # linear2
            rep2(wh), rep2(bh),                             # fused mu/std head
        ],
        out_specs=pl.BlockSpec((C2, tm), lambda i: (0, i)),
        compiler_params=pltpu.CompilerParams(**cp_kwargs),
    )(xt, w1, b1, w2, b2, wh, bh)

    out_t = out.T                                           # (N, 2C)
    C = C2 // 2
    return out_t[:, :C], out_t[:, C:]


# ----------------------------------------------------------------------------
# Init + pure-JAX reference
# ----------------------------------------------------------------------------
def init_params(key, C, G, const=2):
    """PyTorch nn.Linear-style init, PyTorch-native [out, in] weight layout."""
    H = math.ceil(const * C)

    def linear(k, fan_in, fan_out):
        kw, kb = jax.random.split(k)
        bound = 1.0 / math.sqrt(fan_in)
        w = jax.random.uniform(kw, (fan_out, fan_in), jnp.float32, -bound, bound)
        b = jax.random.uniform(kb, (fan_out,), jnp.float32, -bound, bound)
        return w, b

    k1, k2, k3, k4 = jax.random.split(key, 4)
    w1, b1 = linear(k1, G, H)
    w2, b2 = linear(k2, H, H)
    wmu, bmu = linear(k3, H, C)
    wstd, bstd = linear(k4, H, C)
    return (w1, b1, w2, b2, wmu, bmu, wstd, bstd), H


def reference_forward(x, params, compute_dtype=jnp.float32):
    """Pure-JAX reference (same cast pattern as the kernel)."""
    w1, b1, w2, b2, wmu, bmu, wstd, bstd = params
    cd = compute_dtype
    h = jnp.dot(x.astype(cd), w1.T.astype(cd),
                preferred_element_type=jnp.float32) + b1
    h = jnp.maximum(h, 0.0)
    h = jnp.dot(h.astype(cd), w2.T.astype(cd),
                preferred_element_type=jnp.float32) + b2
    h = jnp.maximum(h, 0.0)
    mu = jnp.dot(h.astype(cd), wmu.T.astype(cd),
                 preferred_element_type=jnp.float32) + bmu
    std = jnp.dot(h.astype(cd), wstd.T.astype(cd),
                  preferred_element_type=jnp.float32) + bstd
    return mu, std


if __name__ == "__main__":
    key = jax.random.PRNGKey(0)
    kx, kp, kx2 = jax.random.split(key, 3)

    C, G, const = 4, 16, 2      # pathways, proteins, hidden multiplier
    params, H = init_params(kp, C, G, const)

    # --- f32 path, tiny batch (single grid step, zero padding) --------------
    prep32 = prepare_params(params, jnp.float32)
    N = 16
    x = jax.random.normal(kx, (N, G), jnp.float32)
    mu_z, std_z = state_recognition_net(x, prep32)
    jax.block_until_ready((mu_z, std_z))
    mu_ref, std_ref = reference_forward(x, params)
    assert mu_z.shape == (N, C) and std_z.shape == (N, C)
    assert jnp.allclose(mu_z, mu_ref, atol=1e-4, rtol=1e-4)
    assert jnp.allclose(std_z, std_ref, atol=1e-4, rtol=1e-4)

    # --- ragged batch, forced 2-step grid (v7x-style sharding): exercises ---
    # --- cdiv grid + partial tail block with no wrapper-side padding --------
    N2 = 1000
    x2 = jax.random.normal(kx2, (N2, G), jnp.float32)
    mu2, std2 = state_recognition_net(x2, prep32, tile_m=8192, num_cores=2)
    jax.block_until_ready((mu2, std2))
    mu2_ref, std2_ref = reference_forward(x2, params)
    assert mu2.shape == (N2, C) and std2.shape == (N2, C)
    assert jnp.allclose(mu2, mu2_ref, atol=1e-4, rtol=1e-4)
    assert jnp.allclose(std2, std2_ref, atol=1e-4, rtol=1e-4)

    # --- bf16 matmul operands (v6e/v7x MXU), f32 accumulate + f32 epilogue --
    prep16 = prepare_params(params, jnp.bfloat16)
    mu3, std3 = state_recognition_net(x2, prep16)
    jax.block_until_ready((mu3, std3))
    mu3_ref, std3_ref = reference_forward(x2, params, compute_dtype=jnp.bfloat16)
    assert jnp.allclose(mu3, mu3_ref, atol=1e-2, rtol=1e-2)
    assert jnp.allclose(std3, std3_ref, atol=1e-2, rtol=1e-2)

    print("KERNEL_OK")
</pallas_src>

<mosaic_0001>
module attributes {stable_mosaic.version = 11 : i64} {
  func.func @_state_recog_kernel(%arg0: i32, %arg1: memref<16x16xf32, #tpu.memory_space<vmem>>, %arg2: memref<8x16xf32, #tpu.memory_space<vmem>>, %arg3: memref<8x1xf32, #tpu.memory_space<vmem>>, %arg4: memref<8x8xf32, #tpu.memory_space<vmem>>, %arg5: memref<8x1xf32, #tpu.memory_space<vmem>>, %arg6: memref<8x8xf32, #tpu.memory_space<vmem>>, %arg7: memref<8x1xf32, #tpu.memory_space<vmem>>, %arg8: memref<8x16xf32, #tpu.memory_space<vmem>>) attributes {dimension_semantics = [#tpu.dimension_semantics<parallel>], iteration_bounds = array<i64: 1>, scalar_prefetch = 0 : i64, scratch_operands = 0 : i64, tpu.core_type = #tpu.core_type<tc>, window_params = [{transform_indices = @transform_0, window_bounds = array<i64: 16, 16>}, {pipeline_mode = #tpu.pipeline_mode<synchronous>, transform_indices = @transform_1, window_bounds = array<i64: 8, 16>}, {pipeline_mode = #tpu.pipeline_mode<synchronous>, transform_indices = @transform_2, window_bounds = array<i64: 8, 1>}, {pipeline_mode = #tpu.pipeline_mode<synchronous>, transform_indices = @transform_3, window_bounds = array<i64: 8, 8>}, {pipeline_mode = #tpu.pipeline_mode<synchronous>, transform_indices = @transform_4, window_bounds = array<i64: 8, 1>}, {pipeline_mode = #tpu.pipeline_mode<synchronous>, transform_indices = @transform_5, window_bounds = array<i64: 8, 8>}, {pipeline_mode = #tpu.pipeline_mode<synchronous>, transform_indices = @transform_6, window_bounds = array<i64: 8, 1>}, {transform_indices = @transform_7, window_bounds = array<i64: 8, 16>}]} {
    %c0 = arith.constant 0 : index
    %c0_0 = arith.constant 0 : index
    %0 = vector.load %arg1[%c0, %c0_0] : memref<16x16xf32, #tpu.memory_space<vmem>>, vector<16x16xf32>
    %c0_1 = arith.constant 0 : index
    %c0_2 = arith.constant 0 : index
    %1 = vector.load %arg2[%c0_1, %c0_2] : memref<8x16xf32, #tpu.memory_space<vmem>>, vector<8x16xf32>
    %cst = arith.constant dense<0.000000e+00> : vector<8x16xf32>
    %2 = tpu.matmul %1, %0, %cst {dimension_numbers = #tpu.dot_dimension_numbers<[1], [0], [0], [1], [0, 0, 1, 1], [], []>} : vector<8x16xf32>, vector<16x16xf32>, vector<8x16xf32> -> vector<8x16xf32>
    %c0_3 = arith.constant 0 : index
    %c0_4 = arith.constant 0 : index
    %3 = vector.load %arg3[%c0_3, %c0_4] : memref<8x1xf32, #tpu.memory_space<vmem>>, vector<8x1xf32>
    %4 = vector.broadcast %3 : vector<8x1xf32> to vector<8x16xf32>
    %5 = arith.addf %2, %4 : vector<8x16xf32>
    %cst_5 = arith.constant 0.000000e+00 : f32
    %6 = vector.broadcast %cst_5 : f32 to vector<8x16xf32>
    %7 = arith.maximumf %5, %6 : vector<8x16xf32>
    %c0_6 = arith.constant 0 : index
    %c0_7 = arith.constant 0 : index
    %8 = vector.load %arg4[%c0_6, %c0_7] : memref<8x8xf32, #tpu.memory_space<vmem>>, vector<8x8xf32>
    %cst_8 = arith.constant dense<0.000000e+00> : vector<8x16xf32>
    %9 = tpu.matmul %8, %7, %cst_8 {dimension_numbers = #tpu.dot_dimension_numbers<[1], [0], [0], [1], [0, 0, 1, 1], [], []>} : vector<8x8xf32>, vector<8x16xf32>, vector<8x16xf32> -> vector<8x16xf32>
    %c0_9 = arith.constant 0 : index
    %c0_10 = arith.constant 0 : index
    %10 = vector.load %arg5[%c0_9, %c0_10] : memref<8x1xf32, #tpu.memory_space<vmem>>, vector<8x1xf32>
    %11 = vector.broadcast %10 : vector<8x1xf32> to vector<8x16xf32>
    %12 = arith.addf %9, %11 : vector<8x16xf32>
    %cst_11 = arith.constant 0.000000e+00 : f32
    %13 = vector.broadcast %cst_11 : f32 to vector<8x16xf32>
    %14 = arith.maximumf %12, %13 : vector<8x16xf32>
    %c0_12 = arith.constant 0 : index
    %c0_13 = arith.constant 0 : index
    %15 = vector.load %arg6[%c0_12, %c0_13] : memref<8x8xf32, #tpu.memory_space<vmem>>, vector<8x8xf32>
    %cst_14 = arith.constant dense<0.000000e+00> : vector<8x16xf32>
    %16 = tpu.matmul %15, %14, %cst_14 {dimension_numbers = #tpu.dot_dimension_numbers<[1], [0], [0], [1], [0, 0, 1, 1], [], []>} : vector<8x8xf32>, vector<8x16xf32>, vector<8x16xf32> -> vector<8x16xf32>
    %c0_15 = arith.constant 0 : index
    %c0_16 = arith.constant 0 : index
    %17 = vector.load %arg7[%c0_15, %c0_16] : memref<8x1xf32, #tpu.memory_space<vmem>>, vector<8x1xf32>
    %18 = vector.broadcast %17 : vector<8x1xf32> to vector<8x16xf32>
    %19 = arith.addf %16, %18 : vector<8x16xf32>
    %c0_17 = arith.constant 0 : index
    %c0_18 = arith.constant 0 : index
    %20 = vector.load %arg8[%c0_17, %c0_18] : memref<8x16xf32, #tpu.memory_space<vmem>>, vector<8x16xf32>
    tpu.vector_store %arg8[%c0_17, %c0_18], %19 {strides = array<i32>} : memref<8x16xf32, #tpu.memory_space<vmem>>, vector<8x16xf32>,
    return
  }
  func.func @transform_0(%arg0: i32) -> (i32, i32) {
    %c0_i32 = arith.constant 0 : i32
    %c0_i32_0 = arith.constant 0 : i32
    return %c0_i32, %arg0 : i32, i32
  }
  func.func @transform_1(%arg0: i32) -> (i32, i32) {
    %c0_i32 = arith.constant 0 : i32
    %c0_i32_0 = arith.constant 0 : i32
    %c0_i32_1 = arith.constant 0 : i32
    return %c0_i32, %c0_i32_0 : i32, i32
  }
  func.func @transform_2(%arg0: i32) -> (i32, i32) {
    %c0_i32 = arith.constant 0 : i32
    %c0_i32_0 = arith.constant 0 : i32
    %c0_i32_1 = arith.constant 0 : i32
    return %c0_i32, %c0_i32_0 : i32, i32
  }
  func.func @transform_3(%arg0: i32) -> (i32, i32) {
    %c0_i32 = arith.constant 0 : i32
    %c0_i32_0 = arith.constant 0 : i32
    %c0_i32_1 = arith.constant 0 : i32
    return %c0_i32, %c0_i32_0 : i32, i32
  }
  func.func @transform_4(%arg0: i32) -> (i32, i32) {
    %c0_i32 = arith.constant 0 : i32
    %c0_i32_0 = arith.constant 0 : i32
    %c0_i32_1 = arith.constant 0 : i32
    return %c0_i32, %c0_i32_0 : i32, i32
  }
  func.func @transform_5(%arg0: i32) -> (i32, i32) {
    %c0_i32 = arith.constant 0 : i32
    %c0_i32_0 = arith.constant 0 : i32
    %c0_i32_1 = arith.constant 0 : i32
    return %c0_i32, %c0_i32_0 : i32, i32
  }
  func.func @transform_6(%arg0: i32) -> (i32, i32) {
    %c0_i32 = arith.constant 0 : i32
    %c0_i32_0 = arith.constant 0 : i32
    %c0_i32_1 = arith.constant 0 : i32
    return %c0_i32, %c0_i32_0 : i32, i32
  }
  func.func @transform_7(%arg0: i32) -> (i32, i32) {
    %c0_i32 = arith.constant 0 : i32
    %c0_i32_0 = arith.constant 0 : i32
    return %c0_i32, %arg0 : i32, i32
  }
}

</mosaic_0001>

<bundles_post_ra>
// kernel: tpu_custom_call.1
= control target key start
LH: loop header
LB: loop body
LE: loop exit
PB: predicated region body
PF: predicated region fallthrough
CT: control target
= control target key end

     0   :  { %12 = vsyncpa [#allocation3], 0  ;;  %s330_s0 = inlined_call_operand.vmem [shape: f32[16,16], index: 0, kind: input, shape index: {}]   ;;  %s331_s1 = inlined_call_operand.vmem [shape: f32[8,16], index: 1, kind: input, shape index: {}]   ;;  %s332_s2 = inlined_call_operand.vmem [shape: f32[8,1], index: 2, kind: input, shape index: {}]   ;;  %s333_s3 = inlined_call_operand.hbm [shape: f32[8,8], index: 3, kind: input, shape index: {}]   ;;  %s334_s4 = inlined_call_operand.vmem [shape: f32[8,1], index: 4, kind: input, shape index: {}]   ;;  %s335_s5 = inlined_call_operand.hbm [shape: f32[8,8], index: 5, kind: input, shape index: {}]   ;;  %s336_s6 = inlined_call_operand.vmem [shape: f32[8,1], index: 6, kind: input, shape index: {}]   ;;  %s337_s7 = inlined_call_operand.hbm [shape: f32[8,16], index: 7, kind: output, shape index: {}]  }
   0x1   :  { %13 = vsyncpa [#allocation6], 0 }
   0x2   :  { %14 = vsyncpa [#allocation4], 0  ;;  %s26_s26 = sshll.u32 %s333_s3, 4  ;;  %s257_s27 = smov [#allocation2]   ;;  %s27_s26 = int_to_ptr.hbm [resolvable:$true] %s26_s26 }
   0x3   :  { %s28_s28 = sshll.u32 %s257_s27, 4  ;;  %s39_s8 = sshll.u32 %s335_s5, 4  ;;  %s29_s28 = int_to_ptr.vmem [resolvable:$true] %s28_s28  ;;  %s40_s8 = int_to_ptr.hbm [resolvable:$true] %s39_s8 }
   0x4   :  { %31 = dma.hbm_to_vmem [thread:$0]  %s27_s26, 128, %s29_s28, [#allocation3]  }
   0x5   :  { %s258_s9 = smov [#allocation5]  }
   0x6   :  { %s41_s10 = sshll.u32 %s258_s9, 4  ;;  %s42_s10 = int_to_ptr.vmem [resolvable:$true] %s41_s10 }
   0x7   :  { %44 = dma.hbm_to_vmem [thread:$0]  %s40_s8, 128, %s42_s10, [#allocation6]  }
   0x8   :  { %251 = dma.done.wait [#allocation3], 128  }
   0x9   :  { %252 = vsyncadd [#allocation3], 4294967168 }
   0xa   :  { %253 = dma.done.wait [#allocation6], 128  }
   0xb   :  { %254 = vsyncadd [#allocation6], 4294967168  ;;  %v259_v0 = vmov 0   ;;  %v56_v1 = vld [vmem:[%s330_s0 + $0x8] sm:$0xff]  ;;  %v55_v2 = vld [vmem:[%s330_s0] sm:$0xff]  ;;  %vm64_vm0 = vcmask 130048  }
   0xc   :  { %177 = vset.pattern.permute.xlu0 %v259_v0  ;;  %178 = vset.pattern.permute.xlu1 %v259_v0  ;;  %v57_v3 = vld [vmem:[%s331_s1] sm:$0xff]  ;;  %vm96_vm1 = vcmask 64512   ;;  %v121_v16 = vld [vmem:[#allocation5] sm:$0xff]  ;;  %s159_s21 = sshll.u32 %s337_s7, 4  ;;  %s160_s21 = int_to_ptr.hbm [resolvable:$true] %s159_s21 }
   0xd   :  { %82 = vmatpush.msra.mxu0 %v56_v1  ;;  %v58_v4 = vld [vmem:[%s332_s2] sm:$0xff]  ;;  %s260_s2 = smov [#allocation7]  }
   0xe   :  { %61 = vperm.xlu0 %177, %v58_v4   ;;  %v90_v5 = vld [vmem:[%s334_s4] sm:$0xff]  ;;  %s157_s4 = sshll.u32 %s260_s2, 4  ;;  %s158_s4 = int_to_ptr.vmem [resolvable:$true] %s157_s4 }
   0xf   :  { %83 = vmatpush.msra.mxu0 %v55_v2  ;;  %v89_v10 = vld [vmem:[#allocation2] sm:$0xff] }
  0x10   :  { %170 = vmatmul.msk.f32.vlgmr.msra.gmra.mxu0 %vm64_vm0, %v57_v3  ;;  %v122_v11 = vld [vmem:[%s336_s6] sm:$0xff] }
  0x11   :  { %125 = vperm.xlu1 %178, %v122_v11  }
  0x16   :  { %93 = vperm.xlu0 %177, %v90_v5  }
  0x80   :  { %v62_v6 = vpop.permute.xlu0 %61 }
  0x83   :  { %v126_v17 = vpop.permute.xlu1 %125 }
  0x88   :  { %v94_v12 = vpop.permute.xlu0 %93 }
  0x8d   :  { %v85_v7 = vpop.f32.mrf.mxu0 }
  0x8e   :  { %v86_v8 = vadd.f32 %v85_v7, %v62_v6 }
  0x90   :  { %v88_v9 = vmax.f32 %v86_v8, 0.0 }
  0x92   :  { %115 = vmatpush.msra.mxu1 %v88_v9 }
  0x93   :  { %171 = vmatmul.msk.f32.vlgmr.msra.gmra.mxu1 %vm96_vm1, %v89_v10 }
 0x110   :  { %v117_v13 = vpop.f32.mrf.mxu1 }
 0x111   :  { %v118_v14 = vadd.f32 %v117_v13, %v94_v12 }
 0x113   :  { %v120_v15 = vmax.f32 %v118_v14, 0.0 }
 0x115   :  { %146 = vmatpush.msra.mxu2 %v120_v15 }
 0x116   :  { %172 = vmatmul.msk.f32.vlgmr.msra.gmra.mxu2 %vm96_vm1, %v121_v16 }
 0x199   :  { %v148_v18 = vpop.f32.mrf.mxu2 }
 0x19a   :  { %v149_v19 = vadd.f32 %v148_v18, %v126_v17 }
 0x19c   :  { %151 = vst.msk [vmem:[#allocation7] sm:$0xff] %vm64_vm0, %v149_v19 }
 0x19d   :  { %162 = dma.vmem_to_hbm [thread:$0]  %s158_s4, 128, %s160_s21, [#allocation4]  }
 0x19e   :  { %255 = dma.done.wait [#allocation4], 128  }
 0x19f   :  { %256 = vsyncadd [#allocation4], 4294967168 }
 0x1a0   :  { %167 = vsyncpa [#allocation3], 1 }
 0x1a1   :  { %168 = vsyncpa [#allocation6], 1 }
 0x1a2   :  { %169 = vsyncpa [#allocation4], 1 }

</bundles_post_ra>
